<compile_context>
chip_gen: v6e
topology: v6e:2x2x1
jax: 0.10.0
libtpu: 0.0.40
codegen_flags: <defaults>
</compile_context>

<pallas_src>
import jax
import jax.numpy as jnp
import numpy as np
from jax.experimental import pallas as pl
from jax.experimental.pallas import tpu as pltpu

BN_EPS = 1e-5


def _make_fp_kernel(n_layers, has_points1, s_is_one):
    """Builds the Pallas kernel body for a fixed (static) configuration."""

    def kernel(*refs):
        p = 0
        xyz1 = refs[p][0]            # (3, T)  f32  (channels-major tile, T on lanes)
        p += 1
        xyz2_t_ref = refs[p]         # (1, S, 3) f32 (pre-transposed in wrapper)
        p += 1
        if has_points1:
            pts1 = refs[p][0]        # (D1, T) bf16
            p += 1
        pts2 = refs[p][0]            # (D2, S) bf16
        p += 1

        T = xyz1.shape[1]
        D2, S = pts2.shape

        # ---- inverse-distance-weighted interpolation of points2 onto xyz1 ----
        if s_is_one:
            interp_b = jnp.broadcast_to(pts2[:, 0:1], (D2, T))          # bf16
        else:
            x2 = xyz2_t_ref[0]                                          # (S, 3) f32
            C = x2.shape[1]
            # squared distances in (S, T) layout — pure VPU, exact, non-negative
            d = None
            for c in range(C):
                diff = x2[:, c:c + 1] - xyz1[c:c + 1, :]                # (S, T)
                dd = diff * diff
                d = dd if d is None else d + dd                         # (S, T) f32

            # 3 nearest neighbours via iterative masked-min (== sort()[:, :3]).
            # Ties broken toward the lowest index (stable-sort-like).
            # NOTE: if 1 < S < 3, extra iterations pick a masked 1e30 entry whose
            # weight (~1e-30) is numerically negligible.
            row_ids = jax.lax.broadcasted_iota(jnp.int32, (S, T), 0)
            wrecip = jnp.zeros((S, T), jnp.float32)
            norm = jnp.zeros((1, T), jnp.float32)
            dcur = d
            for _ in range(3):
                dmin = jnp.min(dcur, axis=0, keepdims=True)             # (1, T)
                idx_m = jnp.where(dcur == dmin, row_ids, S)
                sel = jnp.min(idx_m, axis=0, keepdims=True)             # (1, T)
                mask = row_ids == sel                                   # (S, T) bool
                recip = pl.reciprocal(dmin + 1e-8, approx=True)         # (1, T)
                wrecip = jnp.where(mask, recip, wrecip)                 # single select
                norm = norm + recip                                     # in-loop norm
                dcur = jnp.where(mask, 1e30, dcur)                      # mask column

            # normalize in f32 BEFORE the bf16 cast → weights are O(1)
            weight_b = (wrecip * pl.reciprocal(norm, approx=True)).astype(jnp.bfloat16)
            interp = jnp.dot(pts2, weight_b,
                             preferred_element_type=jnp.float32)        # (D2, T)
            interp_b = interp.astype(jnp.bfloat16)

        # ---- MLP: 1x1 conv with folded BatchNorm + ReLU (channels-major) -----
        if has_points1:
            feat = jnp.concatenate([pts1, interp_b], axis=0)            # (D1+D2, T)
        else:
            feat = interp_b

        w0 = refs[p][...]
        b0 = refs[p + 1][...]
        p += 2
        x = jnp.maximum(
            jnp.dot(w0, feat, preferred_element_type=jnp.float32) + b0, 0.0)

        for _ in range(1, n_layers):
            w = refs[p][...]
            b = refs[p + 1][...]
            p += 2
            y = jnp.dot(w, x.astype(jnp.bfloat16),
                        preferred_element_type=jnp.float32) + b
            x = jnp.maximum(y, 0.0)

        refs[p][0] = x.astype(refs[p].dtype)   # output block (1, C_last, T)

    return kernel


def _plan_tiles(n, s, d1, d2, mlp_channels, batch):
    """Pad N to a multiple of 128 and pick a lane-friendly tile that fits VMEM
    and (when possible) keeps the grid at >= 2 steps (v7x megacore)."""
    n_pad = ((n + 127) // 128) * 128
    c_max = max(mlp_channels)
    c_last = mlp_channels[-1]

    def bytes_per_tile(t):
        knn = 6 * s * t * 4                              # (S,T) f32 temporaries
        acts = (d1 + d2 + 2 * c_max) * t * 4             # MLP activations
        pipe = 2 * t * (3 * 4 + d1 * 2 + c_last * 4)     # double-buffered tiles
        return knn + acts + pipe

    budget = 24 * 1024 * 1024                            # margin under 40 MiB limit
    cands = [t for t in (1024, 512, 256, 128)
             if n_pad % t == 0 and bytes_per_tile(t) <= budget]
    if not cands:
        cands = [128]
    for t in cands:
        if batch * (n_pad // t) >= 2:
            return n_pad, t
    return n_pad, cands[-1]


def pointnet_fp_forward(xyz1, xyz2, points1, points2, layer_params,
                        tile_n=None, out_dtype=jnp.float32):
    """Pallas implementation of PointNetFeaturePropagation.forward.

    xyz1:    [B, 3, N]   points1: [B, D1, N] or None
    xyz2:    [B, 3, S]   points2: [B, D2, S]
    layer_params: list of (conv_w [Co,Ci], conv_b [Co], gamma, beta, r_mean, r_var)
    returns: [B, mlp[-1], N]
    """
    B, C3, N = xyz1.shape
    S = xyz2.shape[2]
    has_points1 = points1 is not None
    n_layers = len(layer_params)
    D1 = points1.shape[1] if has_points1 else 0
    D2 = points2.shape[1]
    mlp_channels = [w.shape[0] for (w, *_rest) in layer_params]

    n_pad, auto_tile = _plan_tiles(N, S, D1, D2, mlp_channels, B)
    if tile_n is None:
        tile_n = auto_tile
    assert n_pad % tile_n == 0
    n_tiles = n_pad // tile_n

    xyz1_f = xyz1.astype(jnp.float32)
    if n_pad != N:
        xyz1_f = jnp.pad(xyz1_f, ((0, 0), (0, 0), (0, n_pad - N)))
    xyz2_t = jnp.transpose(xyz2.astype(jnp.float32), (0, 2, 1))   # (B, S, 3)
    pts2_b = points2.astype(jnp.bfloat16)

    inputs = [xyz1_f, xyz2_t]
    in_specs = [
        pl.BlockSpec((1, C3, tile_n), lambda b, t: (b, 0, t)),
        pl.BlockSpec((1, S, C3), lambda b, t: (b, 0, 0)),
    ]
    if has_points1:
        pts1_b = points1.astype(jnp.bfloat16)
        if n_pad != N:
            pts1_b = jnp.pad(pts1_b, ((0, 0), (0, 0), (0, n_pad - N)))
        inputs.append(pts1_b)
        in_specs.append(pl.BlockSpec((1, D1, tile_n), lambda b, t: (b, 0, t)))
    inputs.append(pts2_b)
    in_specs.append(pl.BlockSpec((1, D2, S), lambda b, t: (b, 0, 0)))

    # Fold conv bias + BatchNorm (inference) into the weight and one per-channel add:
    #   BN(Wx + b) = (sc*W) x + (sc*b + beta - sc*rmean)
    for (w, bias, gamma, beta, rmean, rvar) in layer_params:
        cout = w.shape[0]
        sc = (gamma / jnp.sqrt(rvar + BN_EPS)).astype(jnp.float32)
        w_f = (w.astype(jnp.float32) * sc[:, None]).astype(jnp.bfloat16)   # (Co, Ci)
        b_f = (bias.astype(jnp.float32) * sc + beta - rmean * sc) \
            .reshape(cout, 1).astype(jnp.float32)
        for arr in (w_f, b_f):
            inputs.append(arr)
            in_specs.append(pl.BlockSpec(arr.shape, lambda b, t: (0, 0)))

    c_last = mlp_channels[-1]
    kernel = _make_fp_kernel(n_layers, has_points1, S == 1)

    out = pl.pallas_call(
        kernel,
        out_shape=jax.ShapeDtypeStruct((B, c_last, n_pad), out_dtype),
        grid=(B, n_tiles),
        in_specs=in_specs,
        out_specs=pl.BlockSpec((1, c_last, tile_n), lambda b, t: (b, 0, t)),
        compiler_params=pltpu.CompilerParams(
            dimension_semantics=("parallel", "parallel"),
            vmem_limit_bytes=40 * 1024 * 1024),
    )(*inputs)

    if n_pad != N:
        out = out[:, :, :N]
    return out   # [B, C_last, N]


# ---------------------- pure-JAX reference (for checking) ----------------------
def reference_forward(xyz1, xyz2, points1, points2, layer_params):
    x1 = jnp.transpose(xyz1, (0, 2, 1)).astype(jnp.float32)
    x2 = jnp.transpose(xyz2, (0, 2, 1)).astype(jnp.float32)
    p2 = jnp.transpose(points2, (0, 2, 1)).astype(jnp.float32)
    B, N, _ = x1.shape
    S = x2.shape[1]
    if S == 1:
        interp = jnp.tile(p2, (1, N, 1))
    else:
        diff = x1[:, :, None, :] - x2[:, None, :, :]           # [B, N, S, 3]
        d = jnp.sum(diff * diff, axis=-1)                      # exact, >= 0
        idx = jnp.argsort(d, axis=-1)[:, :, :3]
        dtop = jnp.take_along_axis(d, idx, axis=-1)
        recip = 1.0 / (dtop + 1e-8)
        w = recip / jnp.sum(recip, axis=-1, keepdims=True)
        gathered = jax.vmap(lambda pts, ids: pts[ids])(p2, idx)  # [B,N,3,D2]
        interp = jnp.sum(gathered * w[..., None], axis=2)
    if points1 is not None:
        p1 = jnp.transpose(points1, (0, 2, 1)).astype(jnp.float32)
        x = jnp.concatenate([p1, interp], axis=-1)
    else:
        x = interp
    for (wc, bc, gamma, beta, rmean, rvar) in layer_params:
        y = jnp.einsum("bnc,oc->bno", x, wc) + bc
        sc = gamma / jnp.sqrt(rvar + BN_EPS)
        sh = beta - rmean * sc
        x = jnp.maximum(y * sc + sh, 0.0)
    return jnp.transpose(x, (0, 2, 1))


def _make_params(key, in_channel, mlp):
    layer_params = []
    last = in_channel
    keys = jax.random.split(key, 6 * len(mlp))
    k = 0
    for co in mlp:
        w = 0.1 * jax.random.normal(keys[k + 0], (co, last), jnp.float32)
        b = 0.1 * jax.random.normal(keys[k + 1], (co,), jnp.float32)
        gamma = 0.5 + jax.random.uniform(keys[k + 2], (co,), jnp.float32)
        beta = 0.1 * jax.random.normal(keys[k + 3], (co,), jnp.float32)
        rmean = 0.1 * jax.random.normal(keys[k + 4], (co,), jnp.float32)
        rvar = 0.5 + jax.random.uniform(keys[k + 5], (co,), jnp.float32)
        layer_params.append((w, b, gamma, beta, rmean, rvar))
        last = co
        k += 6
    return layer_params


if __name__ == "__main__":
    key = jax.random.PRNGKey(0)

    # --- config A: skip connection, S > 1, N divisible by 128 -----------------
    B, C3, N, S, D1, D2 = 2, 3, 256, 32, 16, 32
    mlp = [64, 32]
    ka, kb, kc, kd, kp, k2 = jax.random.split(key, 6)
    xyz1 = jax.random.normal(ka, (B, C3, N), jnp.float32)
    xyz2 = jax.random.normal(kb, (B, C3, S), jnp.float32)
    points1 = jax.random.normal(kc, (B, D1, N), jnp.float32)
    points2 = jax.random.normal(kd, (B, D2, S), jnp.float32)
    layer_params = _make_params(kp, D1 + D2, mlp)

    out = jax.block_until_ready(
        pointnet_fp_forward(xyz1, xyz2, points1, points2, layer_params))
    ref = reference_forward(xyz1, xyz2, points1, points2, layer_params)
    assert out.shape == (B, mlp[-1], N), out.shape
    np.testing.assert_allclose(np.asarray(out), np.asarray(ref),
                               rtol=2e-2, atol=2e-2)

    # --- config B: no skip connection, S == 1 (broadcast path) ----------------
    B2, N2, S2, D2b = 2, 64, 1, 8
    mlp2 = [16]
    k1, k2a, k2b, k2p, k3 = jax.random.split(k2, 5)
    xyz1b = jax.random.normal(k1, (B2, C3, N2), jnp.float32)
    xyz2b = jax.random.normal(k2a, (B2, C3, S2), jnp.float32)
    points2b = jax.random.normal(k2b, (B2, D2b, S2), jnp.float32)
    layer_params2 = _make_params(k2p, D2b, mlp2)

    out2 = jax.block_until_ready(
        pointnet_fp_forward(xyz1b, xyz2b, None, points2b, layer_params2))
    ref2 = reference_forward(xyz1b, xyz2b, None, points2b, layer_params2)
    assert out2.shape == (B2, mlp2[-1], N2), out2.shape
    np.testing.assert_allclose(np.asarray(out2), np.asarray(ref2),
                               rtol=2e-2, atol=2e-2)

    # --- config C: B == 1, non-128-divisible N (padding + >=2-step grid) ------
    B3, N3, S3, D1c, D2c = 1, 200, 16, 16, 16
    mlp3 = [32, 16]
    k3a, k3b, k3c, k3d, k3p = jax.random.split(k3, 5)
    xyz1c = jax.random.normal(k3a, (B3, C3, N3), jnp.float32)
    xyz2c = jax.random.normal(k3b, (B3, C3, S3), jnp.float32)
    points1c = jax.random.normal(k3c, (B3, D1c, N3), jnp.float32)
    points2c = jax.random.normal(k3d, (B3, D2c, S3), jnp.float32)
    layer_params3 = _make_params(k3p, D1c + D2c, mlp3)

    out3 = jax.block_until_ready(
        pointnet_fp_forward(xyz1c, xyz2c, points1c, points2c, layer_params3))
    ref3 = reference_forward(xyz1c, xyz2c, points1c, points2c, layer_params3)
    assert out3.shape == (B3, mlp3[-1], N3), out3.shape
    np.testing.assert_allclose(np.asarray(out3), np.asarray(ref3),
                               rtol=2e-2, atol=2e-2)

    print("KERNEL_OK")
</pallas_src>

<mosaic_0001>
module attributes {stable_mosaic.version = 11 : i64} {
  func.func @kernel(%arg0: i32, %arg1: i32, %arg2: memref<1x3x256xf32, #tpu.memory_space<vmem>>, %arg3: memref<1x32x3xf32, #tpu.memory_space<vmem>>, %arg4: memref<1x16x256xbf16, #tpu.memory_space<vmem>>, %arg5: memref<1x32x32xbf16, #tpu.memory_space<vmem>>, %arg6: memref<64x48xbf16, #tpu.memory_space<vmem>>, %arg7: memref<64x1xf32, #tpu.memory_space<vmem>>, %arg8: memref<32x64xbf16, #tpu.memory_space<vmem>>, %arg9: memref<32x1xf32, #tpu.memory_space<vmem>>, %arg10: memref<1x32x256xf32, #tpu.memory_space<vmem>>) attributes {dimension_semantics = [#tpu.dimension_semantics<parallel>, #tpu.dimension_semantics<parallel>], iteration_bounds = array<i64: 2, 1>, scalar_prefetch = 0 : i64, scratch_operands = 0 : i64, tpu.core_type = #tpu.core_type<tc>, window_params = [{transform_indices = @transform_0, window_bounds = array<i64: 1, 3, 256>}, {transform_indices = @transform_1, window_bounds = array<i64: 1, 32, 3>}, {transform_indices = @transform_2, window_bounds = array<i64: 1, 16, 256>}, {transform_indices = @transform_3, window_bounds = array<i64: 1, 32, 32>}, {pipeline_mode = #tpu.pipeline_mode<synchronous>, transform_indices = @transform_4, window_bounds = array<i64: 64, 48>}, {pipeline_mode = #tpu.pipeline_mode<synchronous>, transform_indices = @transform_5, window_bounds = array<i64: 64, 1>}, {pipeline_mode = #tpu.pipeline_mode<synchronous>, transform_indices = @transform_6, window_bounds = array<i64: 32, 64>}, {pipeline_mode = #tpu.pipeline_mode<synchronous>, transform_indices = @transform_7, window_bounds = array<i64: 32, 1>}, {transform_indices = @transform_8, window_bounds = array<i64: 1, 32, 256>}]} {
    %c0 = arith.constant 0 : index
    %c0_0 = arith.constant 0 : index
    %c0_1 = arith.constant 0 : index
    %0 = vector.load %arg2[%c0, %c0_0, %c0_1] : memref<1x3x256xf32, #tpu.memory_space<vmem>>, vector<1x3x256xf32>
    %1 = vector.shape_cast %0 : vector<1x3x256xf32> to vector<3x256xf32>
    %c0_2 = arith.constant 0 : index
    %c0_3 = arith.constant 0 : index
    %c0_4 = arith.constant 0 : index
    %2 = vector.load %arg4[%c0_2, %c0_3, %c0_4] : memref<1x16x256xbf16, #tpu.memory_space<vmem>>, vector<1x16x256xbf16>
    %3 = vector.shape_cast %2 : vector<1x16x256xbf16> to vector<16x256xbf16>
    %c0_5 = arith.constant 0 : index
    %c0_6 = arith.constant 0 : index
    %c0_7 = arith.constant 0 : index
    %4 = vector.load %arg5[%c0_5, %c0_6, %c0_7] : memref<1x32x32xbf16, #tpu.memory_space<vmem>>, vector<1x32x32xbf16>
    %5 = vector.shape_cast %4 : vector<1x32x32xbf16> to vector<32x32xbf16>
    %c0_8 = arith.constant 0 : index
    %c0_9 = arith.constant 0 : index
    %c0_10 = arith.constant 0 : index
    %6 = vector.load %arg3[%c0_8, %c0_9, %c0_10] : memref<1x32x3xf32, #tpu.memory_space<vmem>>, vector<1x32x3xf32>
    %7 = vector.shape_cast %6 : vector<1x32x3xf32> to vector<32x3xf32>
    %8 = vector.extract_strided_slice %7 {offsets = [0, 0], sizes = [32, 1], strides = [1, 1]} : vector<32x3xf32> to vector<32x1xf32>
    %9 = vector.extract_strided_slice %1 {offsets = [0, 0], sizes = [1, 256], strides = [1, 1]} : vector<3x256xf32> to vector<1x256xf32>
    %10 = vector.broadcast %8 : vector<32x1xf32> to vector<32x256xf32>
    %11 = vector.broadcast %9 : vector<1x256xf32> to vector<32x256xf32>
    %12 = arith.subf %10, %11 : vector<32x256xf32>
    %13 = arith.mulf %12, %12 : vector<32x256xf32>
    %14 = vector.extract_strided_slice %7 {offsets = [0, 1], sizes = [32, 1], strides = [1, 1]} : vector<32x3xf32> to vector<32x1xf32>
    %15 = vector.extract_strided_slice %1 {offsets = [1, 0], sizes = [1, 256], strides = [1, 1]} : vector<3x256xf32> to vector<1x256xf32>
    %16 = vector.broadcast %14 : vector<32x1xf32> to vector<32x256xf32>
    %17 = vector.broadcast %15 : vector<1x256xf32> to vector<32x256xf32>
    %18 = arith.subf %16, %17 : vector<32x256xf32>
    %19 = arith.mulf %18, %18 : vector<32x256xf32>
    %20 = arith.addf %13, %19 : vector<32x256xf32>
    %21 = vector.extract_strided_slice %7 {offsets = [0, 2], sizes = [32, 1], strides = [1, 1]} : vector<32x3xf32> to vector<32x1xf32>
    %22 = vector.extract_strided_slice %1 {offsets = [2, 0], sizes = [1, 256], strides = [1, 1]} : vector<3x256xf32> to vector<1x256xf32>
    %23 = vector.broadcast %21 : vector<32x1xf32> to vector<32x256xf32>
    %24 = vector.broadcast %22 : vector<1x256xf32> to vector<32x256xf32>
    %25 = arith.subf %23, %24 : vector<32x256xf32>
    %26 = arith.mulf %25, %25 : vector<32x256xf32>
    %27 = arith.addf %20, %26 : vector<32x256xf32>
    %28 = tpu.iota {dimensions = array<i32: 0>} : vector<32x256xi32>
    %cst = arith.constant 0.000000e+00 : f32
    %29 = vector.broadcast %cst : f32 to vector<32x256xf32>
    %cst_11 = arith.constant 0.000000e+00 : f32
    %30 = vector.broadcast %cst_11 : f32 to vector<1x256xf32>
    %cst_12 = arith.constant dense<0x7F800000> : vector<256xf32>
    %31 = vector.multi_reduction <minimumf>, %27, %cst_12 [0] : vector<32x256xf32> to vector<256xf32>
    %32 = vector.shape_cast %31 : vector<256xf32> to vector<1x256xf32>
    %33 = vector.broadcast %32 : vector<1x256xf32> to vector<32x256xf32>
    %34 = arith.cmpf oeq, %27, %33 : vector<32x256xf32>
    %c32_i32 = arith.constant 32 : i32
    %35 = vector.broadcast %c32_i32 : i32 to vector<32x256xi32>
    %36 = arith.select %34, %28, %35 : vector<32x256xi1>, vector<32x256xi32>
    %cst_13 = arith.constant dense<2147483647> : vector<256xi32>
    %37 = vector.multi_reduction <minsi>, %36, %cst_13 [0] : vector<32x256xi32> to vector<256xi32>
    %38 = vector.shape_cast %37 : vector<256xi32> to vector<1x256xi32>
    %39 = vector.broadcast %38 : vector<1x256xi32> to vector<32x256xi32>
    %40 = arith.cmpi eq, %28, %39 : vector<32x256xi32>
    %cst_14 = arith.constant 9.99999993E-9 : f32
    %41 = vector.broadcast %cst_14 : f32 to vector<1x256xf32>
    %42 = arith.addf %32, %41 : vector<1x256xf32>
    %43 = tpu.reciprocal %42 {approx = true} : vector<1x256xf32> -> vector<1x256xf32>
    %44 = vector.shape_cast %43 : vector<1x256xf32> to vector<1x256xf32>
    %45 = vector.broadcast %44 : vector<1x256xf32> to vector<32x256xf32>
    %46 = arith.select %40, %45, %29 : vector<32x256xi1>, vector<32x256xf32>
    %47 = arith.addf %30, %43 : vector<1x256xf32>
    %cst_15 = arith.constant 1.000000e+30 : f32
    %48 = vector.broadcast %cst_15 : f32 to vector<32x256xf32>
    %49 = arith.select %40, %48, %27 : vector<32x256xi1>, vector<32x256xf32>
    %cst_16 = arith.constant dense<0x7F800000> : vector<256xf32>
    %50 = vector.multi_reduction <minimumf>, %49, %cst_16 [0] : vector<32x256xf32> to vector<256xf32>
    %51 = vector.shape_cast %50 : vector<256xf32> to vector<1x256xf32>
    %52 = vector.broadcast %51 : vector<1x256xf32> to vector<32x256xf32>
    %53 = arith.cmpf oeq, %49, %52 : vector<32x256xf32>
    %c32_i32_17 = arith.constant 32 : i32
    %54 = vector.broadcast %c32_i32_17 : i32 to vector<32x256xi32>
    %55 = arith.select %53, %28, %54 : vector<32x256xi1>, vector<32x256xi32>
    %cst_18 = arith.constant dense<2147483647> : vector<256xi32>
    %56 = vector.multi_reduction <minsi>, %55, %cst_18 [0] : vector<32x256xi32> to vector<256xi32>
    %57 = vector.shape_cast %56 : vector<256xi32> to vector<1x256xi32>
    %58 = vector.broadcast %57 : vector<1x256xi32> to vector<32x256xi32>
    %59 = arith.cmpi eq, %28, %58 : vector<32x256xi32>
    %cst_19 = arith.constant 9.99999993E-9 : f32
    %60 = vector.broadcast %cst_19 : f32 to vector<1x256xf32>
    %61 = arith.addf %51, %60 : vector<1x256xf32>
    %62 = tpu.reciprocal %61 {approx = true} : vector<1x256xf32> -> vector<1x256xf32>
    %63 = vector.shape_cast %62 : vector<1x256xf32> to vector<1x256xf32>
    %64 = vector.broadcast %63 : vector<1x256xf32> to vector<32x256xf32>
    %65 = arith.select %59, %64, %46 : vector<32x256xi1>, vector<32x256xf32>
    %66 = arith.addf %47, %62 : vector<1x256xf32>
    %cst_20 = arith.constant 1.000000e+30 : f32
    %67 = vector.broadcast %cst_20 : f32 to vector<32x256xf32>
    %68 = arith.select %59, %67, %49 : vector<32x256xi1>, vector<32x256xf32>
    %cst_21 = arith.constant dense<0x7F800000> : vector<256xf32>
    %69 = vector.multi_reduction <minimumf>, %68, %cst_21 [0] : vector<32x256xf32> to vector<256xf32>
    %70 = vector.shape_cast %69 : vector<256xf32> to vector<1x256xf32>
    %71 = vector.broadcast %70 : vector<1x256xf32> to vector<32x256xf32>
    %72 = arith.cmpf oeq, %68, %71 : vector<32x256xf32>
    %c32_i32_22 = arith.constant 32 : i32
    %73 = vector.broadcast %c32_i32_22 : i32 to vector<32x256xi32>
    %74 = arith.select %72, %28, %73 : vector<32x256xi1>, vector<32x256xi32>
    %cst_23 = arith.constant dense<2147483647> : vector<256xi32>
    %75 = vector.multi_reduction <minsi>, %74, %cst_23 [0] : vector<32x256xi32> to vector<256xi32>
    %76 = vector.shape_cast %75 : vector<256xi32> to vector<1x256xi32>
    %77 = vector.broadcast %76 : vector<1x256xi32> to vector<32x256xi32>
    %78 = arith.cmpi eq, %28, %77 : vector<32x256xi32>
    %cst_24 = arith.constant 9.99999993E-9 : f32
    %79 = vector.broadcast %cst_24 : f32 to vector<1x256xf32>
    %80 = arith.addf %70, %79 : vector<1x256xf32>
    %81 = tpu.reciprocal %80 {approx = true} : vector<1x256xf32> -> vector<1x256xf32>
    %82 = vector.shape_cast %81 : vector<1x256xf32> to vector<1x256xf32>
    %83 = vector.broadcast %82 : vector<1x256xf32> to vector<32x256xf32>
    %84 = arith.select %78, %83, %65 : vector<32x256xi1>, vector<32x256xf32>
    %85 = arith.addf %66, %81 : vector<1x256xf32>
    %86 = tpu.reciprocal %85 {approx = true} : vector<1x256xf32> -> vector<1x256xf32>
    %87 = vector.broadcast %86 : vector<1x256xf32> to vector<32x256xf32>
    %88 = arith.mulf %84, %87 : vector<32x256xf32>
    %89 = arith.truncf %88 : vector<32x256xf32> to vector<32x256xbf16>
    %cst_25 = arith.constant dense<0.000000e+00> : vector<32x256xf32>
    %90 = tpu.matmul %5, %89, %cst_25 {dimension_numbers = #tpu.dot_dimension_numbers<[1], [0], [0], [1], [0, 0, 1, 1], [], []>} : vector<32x32xbf16>, vector<32x256xbf16>, vector<32x256xf32> -> vector<32x256xf32>
    %91 = arith.truncf %90 : vector<32x256xf32> to vector<32x256xbf16>
    %92 = tpu.concatenate %3, %91 in 0 : vector<16x256xbf16>, vector<32x256xbf16> -> vector<48x256xbf16>
    %c0_26 = arith.constant 0 : index
    %c0_27 = arith.constant 0 : index
    %93 = vector.load %arg6[%c0_26, %c0_27] : memref<64x48xbf16, #tpu.memory_space<vmem>>, vector<64x48xbf16>
    %c0_28 = arith.constant 0 : index
    %c0_29 = arith.constant 0 : index
    %94 = vector.load %arg7[%c0_28, %c0_29] : memref<64x1xf32, #tpu.memory_space<vmem>>, vector<64x1xf32>
    %cst_30 = arith.constant dense<0.000000e+00> : vector<64x256xf32>
    %95 = tpu.matmul %93, %92, %cst_30 {dimension_numbers = #tpu.dot_dimension_numbers<[1], [0], [0], [1], [0, 0, 1, 1], [], []>} : vector<64x48xbf16>, vector<48x256xbf16>, vector<64x256xf32> -> vector<64x256xf32>
    %96 = vector.broadcast %94 : vector<64x1xf32> to vector<64x256xf32>
    %97 = arith.addf %95, %96 : vector<64x256xf32>
    %cst_31 = arith.constant 0.000000e+00 : f32
    %98 = vector.broadcast %cst_31 : f32 to vector<64x256xf32>
    %99 = arith.maximumf %97, %98 : vector<64x256xf32>
    %c0_32 = arith.constant 0 : index
    %c0_33 = arith.constant 0 : index
    %100 = vector.load %arg8[%c0_32, %c0_33] : memref<32x64xbf16, #tpu.memory_space<vmem>>, vector<32x64xbf16>
    %c0_34 = arith.constant 0 : index
    %c0_35 = arith.constant 0 : index
    %101 = vector.load %arg9[%c0_34, %c0_35] : memref<32x1xf32, #tpu.memory_space<vmem>>, vector<32x1xf32>
    %102 = arith.truncf %99 : vector<64x256xf32> to vector<64x256xbf16>
    %cst_36 = arith.constant dense<0.000000e+00> : vector<32x256xf32>
    %103 = tpu.matmul %100, %102, %cst_36 {dimension_numbers = #tpu.dot_dimension_numbers<[1], [0], [0], [1], [0, 0, 1, 1], [], []>} : vector<32x64xbf16>, vector<64x256xbf16>, vector<32x256xf32> -> vector<32x256xf32>
    %104 = vector.broadcast %101 : vector<32x1xf32> to vector<32x256xf32>
    %105 = arith.addf %103, %104 : vector<32x256xf32>
    %cst_37 = arith.constant 0.000000e+00 : f32
    %106 = vector.broadcast %cst_37 : f32 to vector<32x256xf32>
    %107 = arith.maximumf %105, %106 : vector<32x256xf32>
    %c0_38 = arith.constant 0 : index
    %c0_39 = arith.constant 0 : index
    %c0_40 = arith.constant 0 : index
    %108 = vector.load %arg10[%c0_38, %c0_39, %c0_40] : memref<1x32x256xf32, #tpu.memory_space<vmem>>, vector<1x32x256xf32>
    %109 = vector.shape_cast %108 : vector<1x32x256xf32> to vector<32x256xf32>
    %110 = vector.shape_cast %107 : vector<32x256xf32> to vector<1x32x256xf32>
    tpu.vector_store %arg10[%c0_38, %c0_39, %c0_40], %110 {strides = array<i32>} : memref<1x32x256xf32, #tpu.memory_space<vmem>>, vector<1x32x256xf32>,
    return
  }
  func.func @transform_0(%arg0: i32, %arg1: i32) -> (i32, i32, i32) {
    %c0_i32 = arith.constant 0 : i32
    %c0_i32_0 = arith.constant 0 : i32
    return %arg0, %c0_i32, %arg1 : i32, i32, i32
  }
  func.func @transform_1(%arg0: i32, %arg1: i32) -> (i32, i32, i32) {
    %c0_i32 = arith.constant 0 : i32
    %c0_i32_0 = arith.constant 0 : i32
    %c0_i32_1 = arith.constant 0 : i32
    return %arg0, %c0_i32, %c0_i32_0 : i32, i32, i32
  }
  func.func @transform_2(%arg0: i32, %arg1: i32) -> (i32, i32, i32) {
    %c0_i32 = arith.constant 0 : i32
    %c0_i32_0 = arith.constant 0 : i32
    return %arg0, %c0_i32, %arg1 : i32, i32, i32
  }
  func.func @transform_3(%arg0: i32, %arg1: i32) -> (i32, i32, i32) {
    %c0_i32 = arith.constant 0 : i32
    %c0_i32_0 = arith.constant 0 : i32
    %c0_i32_1 = arith.constant 0 : i32
    return %arg0, %c0_i32, %c0_i32_0 : i32, i32, i32
  }
  func.func @transform_4(%arg0: i32, %arg1: i32) -> (i32, i32) {
    %c0_i32 = arith.constant 0 : i32
    %c0_i32_0 = arith.constant 0 : i32
    %c0_i32_1 = arith.constant 0 : i32
    return %c0_i32, %c0_i32_0 : i32, i32
  }
  func.func @transform_5(%arg0: i32, %arg1: i32) -> (i32, i32) {
    %c0_i32 = arith.constant 0 : i32
    %c0_i32_0 = arith.constant 0 : i32
    %c0_i32_1 = arith.constant 0 : i32
    return %c0_i32, %c0_i32_0 : i32, i32
  }
  func.func @transform_6(%arg0: i32, %arg1: i32) -> (i32, i32) {
    %c0_i32 = arith.constant 0 : i32
    %c0_i32_0 = arith.constant 0 : i32
    %c0_i32_1 = arith.constant 0 : i32
    return %c0_i32, %c0_i32_0 : i32, i32
  }
  func.func @transform_7(%arg0: i32, %arg1: i32) -> (i32, i32) {
    %c0_i32 = arith.constant 0 : i32
    %c0_i32_0 = arith.constant 0 : i32
    %c0_i32_1 = arith.constant 0 : i32
    return %c0_i32, %c0_i32_0 : i32, i32
  }
  func.func @transform_8(%arg0: i32, %arg1: i32) -> (i32, i32, i32) {
    %c0_i32 = arith.constant 0 : i32
    %c0_i32_0 = arith.constant 0 : i32
    return %arg0, %c0_i32, %arg1 : i32, i32, i32
  }
}

</mosaic_0001>

<bundles_post_ra>
// kernel: tpu_custom_call.1
= control target key start
LH: loop header
LB: loop body
LE: loop exit
PB: predicated region body
PF: predicated region fallthrough
CT: control target
= control target key end

     0   :  { %13 = vsyncpa [#allocation3], 0  ;;  %s2168_s0 = inlined_call_operand.vmem [shape: f32[2,3,256], index: 0, kind: input, shape index: {}]   ;;  %s2169_s1 = inlined_call_operand.vmem [shape: f32[2,32,3], index: 1, kind: input, shape index: {}]   ;;  %s2170_s2 = inlined_call_operand.vmem [shape: bf16[2,16,256], index: 2, kind: input, shape index: {}]   ;;  %s2171_s3 = inlined_call_operand.vmem [shape: bf16[2,32,32], index: 3, kind: input, shape index: {}]   ;;  %s2172_s4 = inlined_call_operand.vmem [shape: bf16[64,48], index: 4, kind: input, shape index: {}]   ;;  %s2173_s5 = inlined_call_operand.vmem [shape: f32[64,1], index: 5, kind: input, shape index: {}]   ;;  %s2174_s6 = inlined_call_operand.vmem [shape: bf16[32,64], index: 6, kind: input, shape index: {}]   ;;  %s2175_s7 = inlined_call_operand.vmem [shape: f32[32,1], index: 7, kind: input, shape index: {}]   ;;  %s2176_s8 = inlined_call_operand.hbm [shape: f32[2,32,256], index: 8, kind: output, shape index: {}]  }
   0x1   :  { %15 = vsyncpa [#allocation3 + $0x1], 0  ;;  %s1674_s27 = smov 0   ;;  %s1676_s28 = smov 0  }
   0x2   :  { %s1678_s29 = smov 0   ;;  %s1680_s30 = smov 0  }
   0x3   :  { %s1682_s9 = smov 0   ;;  %s1684_s10 = smov 0  }
   0x4 LB: > { %s1408_s11 = sadd.s32 4294967295, %s1621_s10   ;;  %s1409_s12 = sadd.s32 4294967294, %s1621_s10   ;;  %s1621_s10 = sphi %s1684_s10, %s21_s10   ;;  %s1617_s9 = sphi %s1682_s9, %s2185_s9   ;;  %s1613_s30 = sphi %s1680_s30, %s2184_s30   ;;  %s1609_s29 = sphi %s1678_s29, %s2183_s29   ;;  %s1605_s28 = sphi %s1676_s28, %s2182_s28   ;;  %s1601_s27 = sphi %s1674_s27, %s2181_s27  }
   0x5   : > { %s33_s13 = sadd.s32 1, %s1617_s9  ;;  %s234_s14 = sadd.s32 1, %s1609_s29 }
   0x6   : > { %p35_p0 = scmp.ge.s32.totalorder %s33_s13, 2  ;;  %p244_p1 = scmp.ne.s32.totalorder %s1609_s29, %s1605_s28 }
   0x7   : > { %p245_p2 = scmp.eq.s32.totalorder %s1408_s11, 1  ;;  %p250_p3 = scmp.ne.s32.totalorder %s1605_s28, %s1601_s27 }
   0x8   : > { %s2187_s13 = smov (%p35_p0, %s33_s13), 0  ;;  %p251_p5 = scmp.eq.s32.totalorder %s1409_s12, 1 }
   0x9   : > { %p1714_p4 = por %p245_p2, %p244_p1  ;;  %s229_s16 = ssub.s32 %s1617_s9, %s2187_s13 }
   0xa   : > { %p1412_p6 = scmp.ge.s32.totalorder %s1621_s10, 1  ;;  %p232_p7 = scmp.eq.s32.totalorder %s229_s16, 0 }
   0xb   : > { %p1721_p8 = por %p251_p5, %p250_p3  ;;  %p323_p9 = scmp.lt.s32.totalorder %s1621_s10, 3 }
   0xc   : > { %s1727_s18 = scalar_select %p232_p7, %s1609_s29, %s234_s14  }
   0xd   : > { %p324_p10 = pnand %p1412_p6, %p323_p9 }
   0xe   : > { %p381_p11 = scmp.lt.s32.totalorder (!%p324_p10), %s1613_s30, 1  ;;  %s377_s26 = sand.u32 (!%p324_p10), 1, %s1605_s28  }
   0xf   : > { %327 = sbr.rel (%p324_p10) target bundleno = 1018 (0x3fa), region = 52  ;;  %s1449_s16 = sshll.u32 (!%p324_p10), %s1613_s30, 10 }
  0x10   : > { %s1626_s22 = smov (!%p324_p10), [#allocation2]  }
  0x14   : > { %v1623_v0 = vmov 0   ;;  %s1733_s19 = scalar_select %p381_p11, %s1613_s30, 1  ;;  %v1624_v5 = vmov 1   ;;  %v1625_v6 = vmov 2   ;;  %v444_v7 = vlaneseq }
  0x15   : > { %1511 = vset.pattern.permute.xlu1 %v1623_v0  ;;  %1510 = vset.pattern.permute.xlu0 %v1623_v0  ;;  %s2123_s30 = scalar_lea.sflag [#allocation3], %s377_s26 }
  0x16   : > { %936 = vmatprep.mubr.bf16.mxu0 %v1623_v0  ;;  %1092 = vmatprep.mubr.bf16.mxu1 %v1623_v0  ;;  %s1446_s20 = sshll.u32 %s1733_s19, 5  ;;  %s1445_s24 = sshll.u32 %s1733_s19, 3  ;;  %v1744_v8 = vshrl.u32 %v444_v7, 7 }
  0x17   : > { %s394_s23 = scalar_lea.vmem %s2169_s1, %s1446_s20  ;;  %s388_s11 = scalar_lea.vmem %s2168_s0, %s1445_s24 }
  0x18   : > { %v421_v1 = vld [vmem:[%s394_s23 + $0x10] sm:$0xff]  ;;  %v419_v2 = vld [vmem:[%s394_s23] sm:$0xff]  ;;  %v422_v3 = vld [vmem:[%s394_s23 + $0x18] sm:$0xff]  ;;  %v446_v11 = vsub.s32 0, %v1744_v8  ;;  %v450_v12 = vsub.s32 4, %v1744_v8  ;;  %v496_v16 = vsub.s32 1, %v1744_v8 }
  0x19   : > { %435 = vperm.xlu1 %1511, %v421_v1   ;;  %425 = vperm.xlu0 %1510, %v419_v2   ;;  %v420_v4 = vld [vmem:[%s394_s23 + $0x8] sm:$0xff]  ;;  %v412_v13 = vld [vmem:[%s388_s11] sm:$0x77]  ;;  %v500_v17 = vsub.s32 5, %v1744_v8  ;;  %v554_v20 = vsub.s32 2, %v1744_v8  ;;  %v558_v21 = vsub.s32 6, %v1744_v8 }
  0x1a   : > { %v447_v18 = vrot.slane %v412_v13, %v446_v11  ;;  %v451_v19 = vrot.slane %v412_v13, %v450_v12  ;;  %v497_v23 = vrot.slane %v412_v13, %v496_v16  ;;  %s1447_s12 = sshll.u32 %s1733_s19, 4  ;;  %s1413_s11 = sshll.u32 %s377_s26, 6 }
  0x1b   : > { %v501_v24 = vrot.slane %v412_v13, %v500_v17  ;;  %v555_v28 = vrot.slane %v412_v13, %v554_v20  ;;  %v559_v29 = vrot.slane %v412_v13, %v558_v21  ;;  %s1798_s20 = scalar_lea.vmem %s2171_s3, %s1447_s12  ;;  %s2037_s23 = scalar_lea.vmem %s2170_s2, %s1447_s12 }
  0x1c   : > { %v457_v26 = vrot.slane %v447_v18, %v446_v11  ;;  %v461_v27 = vrot.slane %v451_v19, %v446_v11  ;;  %v507_v30 = vrot.slane %v497_v23, %v496_v16  ;;  %s2102_s14 = scalar_lea.vmem [#allocation2], %s1413_s11  ;;  %s2115_s12 = scalar_lea.hbm %s2176_s8, %s1449_s16 }
  0x1d   : > { %440 = vperm.xlu1 %1511, %v422_v3   ;;  %430 = vperm.xlu0 %1510, %v420_v4   ;;  %v511_v31 = vrot.slane %v501_v24, %v496_v16  ;;  %v565_v40 = vrot.slane %v555_v28, %v554_v20  ;;  %v569_v41 = vrot.slane %v559_v29, %v554_v20  ;;  %s1287_s19 = sshll.u32 %s2102_s14, 4  ;;  %s1549_s24 = sshll.u32 %s1626_s22, 4  ;;  %s2117_s19 = int_to_ptr.vmem [resolvable:$true] %s1287_s19  ;;  %s1550_s24 = int_to_ptr.vmem [resolvable:$false] %s1549_s24 }
  0x1e   : > { %s1545_s21 = scalar_lea.vmem %s2117_s19, 1024  ;;  %s1551_s25 = scalar_lea.vmem %s1550_s24, 2048 }
  0x1f   : > { %p1546_p12 = scmp.ne.s32.totalorder %s2117_s19, %s1545_s21  ;;  %p1552_p1 = scmp.lt.s32.totalorder %s2117_s19, %s1550_s24 }
  0x20   : > { %p1553_p2 = scmp.lt.s32.totalorder %s1551_s25, %s1545_s21 }
  0x21   : > { %1513 = vset.pattern.permute.xlu1 %v1624_v5  ;;  %1512 = vset.pattern.permute.xlu0 %v1624_v5  ;;  %p1547_p13 = pnand %p1546_p12, %p1714_p4 }
  0x22   : > { %483 = vperm.xlu1 %1513, %v420_v4   ;;  %479 = vperm.xlu0 %1512, %v419_v2   ;;  %p1554_p3 = por %p1553_p2, %p1552_p1 }
  0x23   : > { %p1548_p0 = pneg %p1547_p13 }
  0x25   : > { %p1555_p5 = pnand %p1554_p3, %p1548_p0 }
  0x26   : > { %487 = vperm.xlu1 %1513, %v421_v1   ;;  %491 = vperm.xlu0 %1512, %v422_v3  }
  0x2a   : > { %1514 = vset.pattern.permute.xlu1 %v1625_v6  ;;  %1515 = vset.pattern.permute.xlu0 %v1625_v6 }
  0x2b   : > { %537 = vperm.xlu1 %1514, %v419_v2   ;;  %541 = vperm.xlu0 %1515, %v420_v4  }
  0x2f   : > { %545 = vperm.xlu1 %1514, %v421_v1   ;;  %1516 = vset.pattern.permute.xlu0 %v1623_v0 }
  0x33   : > { %549 = vperm.xlu1 %1514, %v422_v3  }
  0x37   : > { %1517 = vset.pattern.permute.xlu1 %v1623_v0 }
  0x94   : > { %v436_v9 = vpop.permute.xlu1 %435  ;;  %v426_v10 = vpop.permute.xlu0 %425 }
  0x95   : > { %v466_v33 = vsub.f32 %v436_v9, %v457_v26  ;;  %v467_v34 = vsub.f32 %v436_v9, %v461_v27  ;;  %v462_v36 = vsub.f32 %v426_v10, %v457_v26  ;;  %v463_v37 = vsub.f32 %v426_v10, %v461_v27 }
  0x97   : > { %v474_v46 = vmul.f32 %v466_v33, %v466_v33  ;;  %v475_v47 = vmul.f32 %v467_v34, %v467_v34  ;;  %v470_v51 = vmul.f32 %v462_v36, %v462_v36  ;;  %v471_v52 = vmul.f32 %v463_v37, %v463_v37 }
  0x98   : > { %v441_v14 = vpop.permute.xlu1 %440  ;;  %v431_v15 = vpop.permute.xlu0 %430 }
  0x99   : > { %v468_v38 = vsub.f32 %v441_v14, %v457_v26  ;;  %v469_v39 = vsub.f32 %v441_v14, %v461_v27  ;;  %v464_v42 = vsub.f32 %v431_v15, %v457_v26  ;;  %v465_v43 = vsub.f32 %v431_v15, %v461_v27 }
  0x9b   : > { %v476_v53 = vmul.f32 %v468_v38, %v468_v38  ;;  %v477_v54 = vmul.f32 %v469_v39, %v469_v39  ;;  %v472_v60 = vmul.f32 %v464_v42, %v464_v42  ;;  %v473_v61 = vmul.f32 %v465_v43, %v465_v43 }
  0x9d   : > { %v484_v22 = vpop.permute.xlu1 %483  ;;  %v480_v25 = vpop.permute.xlu0 %479 }
  0x9e   : > { %v514_v44 = vsub.f32 %v484_v22, %v507_v30  ;;  %v515_v45 = vsub.f32 %v484_v22, %v511_v31  ;;  %v512_v55 = vsub.f32 %v480_v25, %v507_v30  ;;  %v513_v56 = vsub.f32 %v480_v25, %v511_v31 }
  0xa0   : > { %v522_v62 = vmul.f32 %v514_v44, %v514_v44  ;;  %v523_v63 = vmul.f32 %v515_v45, %v515_v45  ;;  %v520_v11 = vmul.f32 %v512_v55, %v512_v55  ;;  %v521_v12 = vmul.f32 %v513_v56, %v513_v56 }
  0xa1   : > { %v488_v32 = vpop.permute.xlu1 %487  ;;  %v492_v35 = vpop.permute.xlu0 %491 }
  0xa2   : > { %v516_v48 = vsub.f32 %v488_v32, %v507_v30  ;;  %v517_v49 = vsub.f32 %v488_v32, %v511_v31  ;;  %v518_v57 = vsub.f32 %v492_v35, %v507_v30  ;;  %v519_v58 = vsub.f32 %v492_v35, %v511_v31 }
  0xa3   : > { %v530_v15 = vadd.f32 %v522_v62, %v472_v60  ;;  %v531_v16 = vadd.f32 %v523_v63, %v473_v61  ;;  %v528_v28 = vadd.f32 %v520_v11, %v470_v51  ;;  %v529_v29 = vadd.f32 %v521_v12, %v471_v52 }
  0xa4   : > { %v524_v1 = vmul.f32 %v516_v48, %v516_v48  ;;  %v525_v2 = vmul.f32 %v517_v49, %v517_v49  ;;  %v526_v13 = vmul.f32 %v518_v57, %v518_v57  ;;  %v527_v14 = vmul.f32 %v519_v58, %v519_v58 }
  0xa5   : > { %v1780_v58 = vadd.s32 8, %v1744_v8  ;;  %v1783_v61 = vadd.s32 16, %v1744_v8  ;;  %v1786_v62 = vadd.s32 24, %v1744_v8 }
  0xa6   : > { %v538_v50 = vpop.permute.xlu1 %537  ;;  %v542_v59 = vpop.permute.xlu0 %541  ;;  %v532_v19 = vadd.f32 %v524_v1, %v474_v46  ;;  %v533_v20 = vadd.f32 %v525_v2, %v475_v47  ;;  %v534_v30 = vadd.f32 %v526_v13, %v476_v53  ;;  %v535_v31 = vadd.f32 %v527_v14, %v477_v54 }
  0xa7   : > { %v570_v3 = vsub.f32 %v538_v50, %v565_v40  ;;  %v571_v4 = vsub.f32 %v538_v50, %v569_v41  ;;  %v572_v6 = vsub.f32 %v542_v59, %v565_v40  ;;  %v573_v7 = vsub.f32 %v542_v59, %v569_v41 }
  0xa9   : > { %v578_v21 = vmul.f32 %v570_v3, %v570_v3  ;;  %v579_v22 = vmul.f32 %v571_v4, %v571_v4  ;;  %v580_v24 = vmul.f32 %v572_v6, %v572_v6  ;;  %v581_v25 = vmul.f32 %v573_v7, %v573_v7 }
  0xaa   : > { %v546_v5 = vpop.permute.xlu1 %545 }
  0xab   : > { %v574_v9 = vsub.f32 %v546_v5, %v565_v40  ;;  %v575_v10 = vsub.f32 %v546_v5, %v569_v41  ;;  %v1759_v36 = vadd.f32 %v578_v21, %v528_v28  ;;  %v1761_v37 = vadd.f32 %v579_v22, %v529_v29 }
  0xac   : > { %v1763_v38 = vadd.f32 %v580_v24, %v530_v15  ;;  %v1765_v39 = vadd.f32 %v581_v25, %v531_v16 }
  0xad   : > { %v582_v17 = vmul.f32 %v574_v9, %v574_v9  ;;  %v583_v18 = vmul.f32 %v575_v10, %v575_v10 }
  0xae   : > { %v550_v23 = vpop.permute.xlu1 %549 }
  0xaf   : > { %v576_v26 = vsub.f32 %v550_v23, %v565_v40  ;;  %v577_v27 = vsub.f32 %v550_v23, %v569_v41  ;;  %v1755_v32 = vadd.f32 %v582_v17, %v532_v19  ;;  %v1757_v33 = vadd.f32 %v583_v18, %v533_v20 }
  0xb1   : > { %v584_v34 = vmul.f32 %v576_v26, %v576_v26  ;;  %v585_v35 = vmul.f32 %v577_v27, %v577_v27  ;;  %v599_v42 = vmin.f32 %v1759_v36, %v1755_v32  ;;  %v608_v43 = vmin.f32 %v1761_v37, %v1757_v33 }
  0xb3   : > { %v1767_v40 = vadd.f32 %v584_v34, %v534_v30  ;;  %v1769_v41 = vadd.f32 %v585_v35, %v535_v31 }
  0xb5   : > { %v600_v44 = vmin.f32 %v1763_v38, %v1767_v40  ;;  %v609_v45 = vmin.f32 %v1765_v39, %v1769_v41 }
  0xb7   : > { %v601_v46 = vmin.f32 %v599_v42, %v600_v44  ;;  %v610_v47 = vmin.f32 %v608_v43, %v609_v45 }
  0xb9   : > { %v602_v48 = vrot.slane %v601_v46, 4  ;;  %v611_v49 = vrot.slane %v610_v47, 4 }
  0xbb   : > { %v603_v50 = vmin.f32 %v601_v46, %v602_v48  ;;  %v612_v51 = vmin.f32 %v610_v47, %v611_v49 }
  0xbd   : > { %v604_v52 = vrot.slane %v603_v50, 2  ;;  %v613_v53 = vrot.slane %v612_v51, 2 }
  0xbf   : > { %v605_v54 = vmin.f32 %v603_v50, %v604_v52  ;;  %v614_v55 = vmin.f32 %v612_v51, %v613_v53 }
  0xc1   : > { %v606_v56 = vrot.slane %v605_v54, 1  ;;  %v615_v57 = vrot.slane %v614_v55, 1 }
  0xc3   : > { %v607_v59 = vmin.f32 %v605_v54, %v606_v56  ;;  %v616_v60 = vmin.f32 %v614_v55, %v615_v57 }
  0xc5   : > { %vm617_vm0 = vcmp.eq.f32.partialorder %v1759_v36, %v607_v59  ;;  %vm618_vm1 = vcmp.eq.f32.partialorder %v1761_v37, %v616_v60  ;;  %vm619_vm2 = vcmp.eq.f32.partialorder %v1763_v38, %v607_v59  ;;  %vm620_vm3 = vcmp.eq.f32.partialorder %v1765_v39, %v616_v60 }
  0xc6   : > { %vm621_vm4 = vcmp.eq.f32.partialorder %v1755_v32, %v607_v59  ;;  %vm622_vm5 = vcmp.eq.f32.partialorder %v1757_v33, %v616_v60  ;;  %vm623_vm6 = vcmp.eq.f32.partialorder %v1767_v40, %v607_v59  ;;  %vm624_vm7 = vcmp.eq.f32.partialorder %v1769_v41, %v616_v60 }
  0xc7   : > { %v625_v63 = vsel %vm617_vm0, %v1744_v8, 32  ;;  %v626_v1 = vsel %vm618_vm1, %v1744_v8, 32  ;;  %v627_v2 = vsel %vm619_vm2, %v1780_v58, 32  ;;  %v628_v3 = vsel %vm620_vm3, %v1780_v58, 32 }
  0xc8   : > { %v629_v4 = vsel %vm621_vm4, %v1783_v61, 32  ;;  %v630_v5 = vsel %vm622_vm5, %v1783_v61, 32  ;;  %v631_v6 = vsel %vm623_vm6, %v1786_v62, 32  ;;  %v632_v7 = vsel %vm624_vm7, %v1786_v62, 32 }
  0xc9   : > { %vm633_vm8 = vcmp.lt.s32.totalorder %v625_v63, %v629_v4  ;;  %vm635_vm9 = vcmp.lt.s32.totalorder %v627_v2, %v631_v6  ;;  %vm648_vm10 = vcmp.lt.s32.totalorder %v626_v1, %v630_v5  ;;  %vm650_vm11 = vcmp.lt.s32.totalorder %v628_v3, %v632_v7 }
  0xca   : > { %v634_v9 = vsel %vm633_vm8, %v625_v63, %v629_v4  ;;  %v636_v10 = vsel %vm635_vm9, %v627_v2, %v631_v6  ;;  %v649_v11 = vsel %vm648_vm10, %v626_v1, %v630_v5  ;;  %v651_v12 = vsel %vm650_vm11, %v628_v3, %v632_v7 }
  0xcb   : > { %vm637_vm12 = vcmp.lt.s32.totalorder %v634_v9, %v636_v10  ;;  %vm652_vm13 = vcmp.lt.s32.totalorder %v649_v11, %v651_v12  ;;  %v671_v13 = vadd.f32 1e-08, %v607_v59  ;;  %v672_v14 = vadd.f32 1e-08, %v616_v60 }
  0xcc   : > { %v638_v15 = vsel %vm637_vm12, %v634_v9, %v636_v10  ;;  %v653_v16 = vsel %vm652_vm13, %v649_v11, %v651_v12 }
  0xcd   : > { %v639_v17 = vrot.slane %v638_v15, 4  ;;  %v654_v18 = vrot.slane %v653_v16, 4  ;;  %1529 = vrcp.f32 %v672_v14 }
  0xce   : > { %1531 = vrcp.f32 %v671_v13 }
  0xcf   : > { %vm640_vm14 = vcmp.lt.s32.totalorder %v638_v15, %v639_v17  ;;  %vm655_vm15 = vcmp.lt.s32.totalorder %v653_v16, %v654_v18 }
  0xd0   : > { %v641_v19 = vsel %vm640_vm14, %v638_v15, %v639_v17  ;;  %v656_v20 = vsel %vm655_vm15, %v653_v16, %v654_v18 }
  0xd1   : > { %v642_v21 = vrot.slane %v641_v19, 2  ;;  %v657_v22 = vrot.slane %v656_v20, 2 }
  0xd3   : > { %vm643_vm0 = vcmp.lt.s32.totalorder %v641_v19, %v642_v21  ;;  %vm658_vm1 = vcmp.lt.s32.totalorder %v656_v20, %v657_v22 }
  0xd4   : > { %v644_v23 = vsel %vm643_vm0, %v641_v19, %v642_v21  ;;  %v659_v24 = vsel %vm658_vm1, %v656_v20, %v657_v22 }
  0xd5   : > { %v645_v25 = vrot.slane %v644_v23, 1  ;;  %v660_v26 = vrot.slane %v659_v24, 1 }
  0xd7   : > { %vm646_vm2 = vcmp.lt.s32.totalorder %v644_v23, %v645_v25  ;;  %vm661_vm3 = vcmp.lt.s32.totalorder %v659_v24, %v660_v26 }
  0xd8   : > { %v647_v27 = vsel %vm646_vm2, %v644_v23, %v645_v25  ;;  %v662_v28 = vsel %vm661_vm3, %v659_v24, %v660_v26 }
  0xd9   : > { %vm665_vm4 = vcmp.eq.s32.totalorder %v1780_v58, %v647_v27  ;;  %vm669_vm5 = vcmp.eq.s32.totalorder %v1786_v62, %v647_v27  ;;  %vm664_vm6 = vcmp.eq.s32.totalorder %v1744_v8, %v662_v28  ;;  %vm666_vm7 = vcmp.eq.s32.totalorder %v1780_v58, %v662_v28 }
  0xda   : > { %v1819_v29 = vsel %vm665_vm4, 1e+30, %v1763_v38  ;;  %v1824_v30 = vsel %vm669_vm5, 1e+30, %v1767_v40  ;;  %vm668_vm8 = vcmp.eq.s32.totalorder %v1783_v61, %v662_v28  ;;  %vm670_vm9 = vcmp.eq.s32.totalorder %v1786_v62, %v662_v28  ;;  %v1828_v31 = vpop.eup %1529 }
  0xdb   : > { %v694_v34 = vmin.f32 %v1819_v29, %v1824_v30  ;;  %v1835_v35 = vsel %vm664_vm6, 1e+30, %v1761_v37  ;;  %v1840_v38 = vsel %vm666_vm7, 1e+30, %v1765_v39  ;;  %v1843_v40 = vsel %vm668_vm8, 1e+30, %v1757_v33  ;;  %v1845_v42 = vpop.eup %1531 }
  0xdc   : > { %v1848_v43 = vsel %vm668_vm8, %v1828_v31, 0.0  ;;  %v1851_v44 = vsel %vm670_vm9, %v1828_v31, 0.0  ;;  %v1854_v45 = vsel %vm670_vm9, 1e+30, %v1769_v41  ;;  %v702_v37 = vmin.f32 %v1835_v35, %v1843_v40 }
  0xdd   : > { %v703_v39 = vmin.f32 %v1840_v38, %v1854_v45  ;;  %vm663_vm10 = vcmp.eq.s32.totalorder %v1744_v8, %v647_v27  ;;  %vm667_vm11 = vcmp.eq.s32.totalorder %v1783_v61, %v647_v27  ;;  %v1865_v33 = vsel %vm669_vm5, %v1845_v42, 0.0 }
  0xde   : > { %v1868_v46 = vsel %vm667_vm11, %v1845_v42, 0.0  ;;  %v1871_v41 = vsel %vm663_vm10, 1e+30, %v1759_v36  ;;  %v1874_v47 = vsel %vm667_vm11, 1e+30, %v1755_v32  ;;  %v1879_v48 = vsel %vm664_vm6, %v1828_v31, 0.0 }
  0xdf   : > { %v704_v49 = vmin.f32 %v702_v37, %v703_v39  ;;  %v693_v50 = vmin.f32 %v1871_v41, %v1874_v47  ;;  %v1886_v51 = vsel %vm666_vm7, %v1828_v31, 0.0  ;;  %v1889_v36 = vsel %vm663_vm10, %v1845_v42, 0.0 }
  0xe0   : > { %v1894_v32 = vsel %vm665_vm4, %v1845_v42, 0.0 }
  0xe1   : > { %v705_v52 = vrot.slane %v704_v49, 4  ;;  %v695_v53 = vmin.f32 %v693_v50, %v694_v34 }
  0xe3   : > { %v706_v54 = vmin.f32 %v704_v49, %v705_v52  ;;  %v696_v55 = vrot.slane %v695_v53, 4 }
  0xe5   : > { %v707_v56 = vrot.slane %v706_v54, 2  ;;  %v697_v57 = vmin.f32 %v695_v53, %v696_v55 }
  0xe7   : > { %v708_v59 = vmin.f32 %v706_v54, %v707_v56  ;;  %v698_v60 = vrot.slane %v697_v57, 2 }
  0xe9   : > { %v709_v63 = vrot.slane %v708_v59, 1  ;;  %v699_v1 = vmin.f32 %v697_v57, %v698_v60 }
  0xeb   : > { %v1896_v2 = vmin.f32 %v708_v59, %v709_v63  ;;  %v700_v3 = vrot.slane %v699_v1, 1 }
  0xed   : > { %vm712_vm12 = vcmp.eq.f32.partialorder %v1835_v35, %v1896_v2  ;;  %vm714_vm13 = vcmp.eq.f32.partialorder %v1840_v38, %v1896_v2  ;;  %vm716_vm14 = vcmp.eq.f32.partialorder %v1843_v40, %v1896_v2  ;;  %vm718_vm15 = vcmp.eq.f32.partialorder %v1854_v45, %v1896_v2 }
  0xee   : > { %v720_v4 = vsel %vm712_vm12, %v1744_v8, 32  ;;  %v722_v5 = vsel %vm714_vm13, %v1780_v58, 32  ;;  %v724_v6 = vsel %vm716_vm14, %v1783_v61, 32  ;;  %v726_v7 = vsel %vm718_vm15, %v1786_v62, 32 }
  0xef   : > { %vm742_vm0 = vcmp.lt.s32.totalorder %v720_v4, %v724_v6  ;;  %vm744_vm1 = vcmp.lt.s32.totalorder %v722_v5, %v726_v7  ;;  %v1910_v9 = vmin.f32 %v699_v1, %v700_v3 }
  0xf0   : > { %v743_v10 = vsel %vm742_vm0, %v720_v4, %v724_v6  ;;  %v745_v11 = vsel %vm744_vm1, %v722_v5, %v726_v7  ;;  %v766_v4 = vadd.f32 1e-08, %v1896_v2 }
  0xf1   : > { %vm746_vm2 = vcmp.lt.s32.totalorder %v743_v10, %v745_v11  ;;  %vm711_vm3 = vcmp.eq.f32.partialorder %v1871_v41, %v1910_v9  ;;  %vm713_vm4 = vcmp.eq.f32.partialorder %v1819_v29, %v1910_v9  ;;  %vm715_vm5 = vcmp.eq.f32.partialorder %v1874_v47, %v1910_v9 }
  0xf2   : > { %v747_v12 = vsel %vm746_vm2, %v743_v10, %v745_v11  ;;  %vm717_vm6 = vcmp.eq.f32.partialorder %v1824_v30, %v1910_v9  ;;  %v719_v13 = vsel %vm711_vm3, %v1744_v8, 32  ;;  %v721_v15 = vsel %vm713_vm4, %v1780_v58, 32 }
  0xf3   : > { %v748_v14 = vrot.slane %v747_v12, 4  ;;  %v723_v16 = vsel %vm715_vm5, %v1783_v61, 32  ;;  %v725_v17 = vsel %vm717_vm6, %v1786_v62, 32  ;;  %1533 = vrcp.f32 %v766_v4 }
  0xf4   : > { %vm727_vm7 = vcmp.lt.s32.totalorder %v719_v13, %v723_v16  ;;  %vm729_vm8 = vcmp.lt.s32.totalorder %v721_v15, %v725_v17 }
  0xf5   : > { %vm749_vm9 = vcmp.lt.s32.totalorder %v747_v12, %v748_v14  ;;  %v728_v18 = vsel %vm727_vm7, %v719_v13, %v723_v16  ;;  %v730_v19 = vsel %vm729_vm8, %v721_v15, %v725_v17  ;;  %v765_v16 = vadd.f32 1e-08, %v1910_v9 }
  0xf6   : > { %v750_v20 = vsel %vm749_vm9, %v747_v12, %v748_v14  ;;  %vm731_vm10 = vcmp.lt.s32.totalorder %v728_v18, %v730_v19 }
  0xf7   : > { %v751_v21 = vrot.slane %v750_v20, 2  ;;  %v732_v22 = vsel %vm731_vm10, %v728_v18, %v730_v19 }
  0xf8   : > { %v733_v23 = vrot.slane %v732_v22, 4 }
  0xf9   : > { %vm752_vm11 = vcmp.lt.s32.totalorder %v750_v20, %v751_v21 }
  0xfa   : > { %v753_v24 = vsel %vm752_vm11, %v750_v20, %v751_v21  ;;  %vm734_vm12 = vcmp.lt.s32.totalorder %v732_v22, %v733_v23 }
  0xfb   : > { %v754_v25 = vrot.slane %v753_v24, 1  ;;  %v735_v26 = vsel %vm734_vm12, %v732_v22, %v733_v23 }
  0xfc   : > { %v736_v27 = vrot.slane %v735_v26, 2 }
  0xfd   : > { %vm755_vm13 = vcmp.lt.s32.totalorder %v753_v24, %v754_v25 }
  0xfe   : > { %v1924_v28 = vsel %vm755_vm13, %v753_v24, %v754_v25  ;;  %vm737_vm14 = vcmp.lt.s32.totalorder %v735_v26, %v736_v27 }
  0xff   : > { %vm758_vm15 = vcmp.eq.s32.totalorder %v1744_v8, %v1924_v28  ;;  %vm760_vm0 = vcmp.eq.s32.totalorder %v1780_v58, %v1924_v28  ;;  %vm762_vm1 = vcmp.eq.s32.totalorder %v1783_v61, %v1924_v28  ;;  %vm764_vm2 = vcmp.eq.s32.totalorder %v1786_v62, %v1924_v28 }
 0x100   : > { %v780_v34 = vsel %vm758_vm15, 1e+30, %v1835_v35  ;;  %v782_v37 = vsel %vm760_vm0, 1e+30, %v1840_v38  ;;  %v784_v39 = vsel %vm762_vm1, 1e+30, %v1843_v40  ;;  %v738_v50 = vsel %vm737_vm14, %v735_v26, %v736_v27  ;;  %v1534_v27 = vpop.eup %1533 }
 0x101   : > { %v786_v49 = vsel %vm764_vm2, 1e+30, %v1854_v45  ;;  %v796_v52 = vmin.f32 %v780_v34, %v784_v39  ;;  %v739_v54 = vrot.slane %v738_v50, 1 }
 0x102   : > { %v797_v53 = vmin.f32 %v782_v37, %v786_v49 }
 0x103   : > { %vm740_vm3 = vcmp.lt.s32.totalorder %v738_v50, %v739_v54 }
 0x104   : > { %v798_v35 = vmin.f32 %v796_v52, %v797_v53  ;;  %v1950_v55 = vsel %vm740_vm3, %v738_v50, %v739_v54  ;;  %v778_v50 = vadd.f32 %v1534_v27, %v1828_v31  ;;  %v774_v31 = vsel %vm762_vm1, %v1534_v27, %v1848_v43 }
 0x105   : > { %vm757_vm4 = vcmp.eq.s32.totalorder %v1744_v8, %v1950_v55  ;;  %vm2177_vm5 = vcmp.eq.s32.totalorder %v1780_v58, %v1950_v55  ;;  %vm761_vm6 = vcmp.eq.s32.totalorder %v1783_v61, %v1950_v55  ;;  %vm763_vm7 = vcmp.eq.s32.totalorder %v1786_v62, %v1950_v55 }
 0x106   : > { %v799_v56 = vrot.slane %v798_v35, 4  ;;  %v779_v38 = vsel %vm757_vm4, 1e+30, %v1871_v41  ;;  %v781_v40 = vsel %vm2177_vm5, 1e+30, %v1819_v29 }
 0x107   : > { %v783_v57 = vsel %vm761_vm6, 1e+30, %v1874_v47  ;;  %v785_v59 = vsel %vm763_vm7, 1e+30, %v1824_v30 }
 0x108   : > { %v800_v45 = vmin.f32 %v798_v35, %v799_v56  ;;  %v787_v60 = vmin.f32 %v779_v38, %v783_v57  ;;  %v788_v63 = vmin.f32 %v781_v40, %v785_v59 }
 0x10a   : > { %v801_v1 = vrot.slane %v800_v45, 2  ;;  %v789_v41 = vmin.f32 %v787_v60, %v788_v63 }
 0x10c   : > { %v802_v3 = vmin.f32 %v800_v45, %v801_v1  ;;  %v790_v5 = vrot.slane %v789_v41, 4 }
 0x10e   : > { %v803_v29 = vrot.slane %v802_v3, 1  ;;  %v791_v6 = vmin.f32 %v789_v41, %v790_v5  ;;  %v770_v41 = vsel %vm758_vm15, %v1534_v27, %v1879_v48 }
 0x110   : > { %v804_v7 = vmin.f32 %v802_v3, %v803_v29  ;;  %v792_v10 = vrot.slane %v791_v6, 2  ;;  %v772_v3 = vsel %vm760_vm0, %v1534_v27, %v1886_v51 }
 0x112   : > { %vm806_vm8 = vcmp.eq.f32.partialorder %v780_v34, %v804_v7  ;;  %vm808_vm9 = vcmp.eq.f32.partialorder %v782_v37, %v804_v7  ;;  %vm810_vm10 = vcmp.eq.f32.partialorder %v784_v39, %v804_v7  ;;  %vm812_vm11 = vcmp.eq.f32.partialorder %v786_v49, %v804_v7 }
 0x113   : > { %v814_v47 = vsel %vm806_vm8, %v1744_v8, 32  ;;  %v816_v30 = vsel %vm808_vm9, %v1780_v58, 32  ;;  %v818_v11 = vsel %vm810_vm10, %v1783_v61, 32  ;;  %v820_v12 = vsel %vm812_vm11, %v1786_v62, 32 }
 0x114   : > { %vm836_vm12 = vcmp.lt.s32.totalorder %v814_v47, %v818_v11  ;;  %vm838_vm13 = vcmp.lt.s32.totalorder %v816_v30, %v820_v12  ;;  %v860_v2 = vadd.f32 1e-08, %v804_v7  ;;  %v793_v13 = vmin.f32 %v791_v6, %v792_v10 }
 0x115   : > { %v837_v14 = vsel %vm836_vm12, %v814_v47, %v818_v11  ;;  %v839_v15 = vsel %vm838_vm13, %v816_v30, %v820_v12 }
 0x116   : > { %vm840_vm14 = vcmp.lt.s32.totalorder %v837_v14, %v839_v15  ;;  %1535 = vrcp.f32 %v860_v2  ;;  %v794_v17 = vrot.slane %v793_v13, 1 }
 0x117   : > { %v841_v18 = vsel %vm840_vm14, %v837_v14, %v839_v15  ;;  %1537 = vrcp.f32 %v765_v16 }
 0x118   : > { %v842_v19 = vrot.slane %v841_v18, 4  ;;  %v795_v20 = vmin.f32 %v793_v13, %v794_v17 }
 0x11a   : > { %vm843_vm3 = vcmp.lt.s32.totalorder %v841_v18, %v842_v19  ;;  %vm805_vm8 = vcmp.eq.f32.partialorder %v779_v38, %v795_v20  ;;  %vm807_vm9 = vcmp.eq.f32.partialorder %v781_v40, %v795_v20  ;;  %vm809_vm10 = vcmp.eq.f32.partialorder %v783_v57, %v795_v20 }
 0x11b   : > { %v844_v21 = vsel %vm843_vm3, %v841_v18, %v842_v19  ;;  %vm811_vm11 = vcmp.eq.f32.partialorder %v785_v59, %v795_v20  ;;  %v813_v22 = vsel %vm805_vm8, %v1744_v8, 32  ;;  %v815_v23 = vsel %vm807_vm9, %v1780_v58, 32  ;;  %v983_v19 = vld [vmem:[%s2173_s5 + $0x20] sm:$0xff] }
 0x11c   : > { %v845_v24 = vrot.slane %v844_v21, 2  ;;  %v817_v9 = vsel %vm809_vm10, %v1783_v61, 32  ;;  %v819_v25 = vsel %vm811_vm11, %v1786_v62, 32  ;;  %v859_v26 = vadd.f32 1e-08, %v795_v20  ;;  %v984_v20 = vld [vmem:[%s2173_s5 + $0x28] sm:$0xff] }
 0x11d   : > { %vm821_vm12 = vcmp.lt.s32.totalorder %v813_v22, %v817_v9  ;;  %vm823_vm13 = vcmp.lt.s32.totalorder %v815_v23, %v819_v25 }
 0x11e   : > { %v822_v34 = vsel %vm821_vm12, %v813_v22, %v817_v9  ;;  %v824_v37 = vsel %vm823_vm13, %v815_v23, %v819_v25  ;;  %1539 = vrcp.f32 %v859_v26  ;;  %vm846_vm5 = vcmp.lt.s32.totalorder %v844_v21, %v845_v24  ;;  %v982_v22 = vld [vmem:[%s2173_s5 + $0x18] sm:$0xff]  ;;  %v979_v23 = vld [vmem:[%s2173_s5] sm:$0xff]  ;;  %v1154_v25 = vld [vmem:[%s2175_s7 + $0x8] sm:$0xff] }
 0x11f   : > { %vm825_vm14 = vcmp.lt.s32.totalorder %v822_v34, %v824_v37  ;;  %v847_v53 = vsel %vm846_vm5, %v844_v21, %v845_v24  ;;  %v981_v21 = vld [vmem:[%s2173_s5 + $0x10] sm:$0xff]  ;;  %v980_v24 = vld [vmem:[%s2173_s5 + $0x8] sm:$0xff]  ;;  %v1153_v9 = vld [vmem:[%s2175_s7] sm:$0xff] }
 0x120   : > { %v826_v39 = vsel %vm825_vm14, %v822_v34, %v824_v37  ;;  %v848_v40 = vrot.slane %v847_v53, 1  ;;  %vm2180_vm14 = vcmp.eq.s32.totalorder %v1780_v58, %v1950_v55  ;;  %v985_v55 = vld [vmem:[%s2173_s5 + $0x30] sm:$0xff] }
 0x121   : > { %v827_v49 = vrot.slane %v826_v39, 4  ;;  %1019 = vperm.xlu0 %1516, %v985_v55   ;;  %v1155_v26 = vld [vmem:[%s2175_s7 + $0x10] sm:$0xff] }
 0x122   : > { %vm849_vm9 = vcmp.lt.s32.totalorder %v847_v53, %v848_v40 }
 0x123   : > { %v1536_v52 = vpop.eup %1535  ;;  %vm828_vm3 = vcmp.lt.s32.totalorder %v826_v39, %v827_v49  ;;  %v850_v63 = vsel %vm849_vm9, %v847_v53, %v848_v40  ;;  %v1520_v40 = vld [vmem:[%s2037_s23 + $0x4] ss:$8 sps:$4 sm:$0xff]  }
 0x124   : > { %v872_v54 = vadd.f32 %v1536_v52, %v778_v50  ;;  %v829_v35 = vsel %vm828_vm3, %v826_v39, %v827_v49  ;;  %v1538_v38 = vpop.eup %1537  ;;  %vm856_vm10 = vcmp.eq.s32.totalorder %v1783_v61, %v850_v63  ;;  %vm858_vm5 = vcmp.eq.s32.totalorder %v1786_v62, %v850_v63 }
 0x125   : > { %v830_v56 = vrot.slane %v829_v35, 2  ;;  %v777_v45 = vadd.f32 %v1538_v38, %v1845_v42  ;;  %vm852_vm11 = vcmp.eq.s32.totalorder %v1744_v8, %v850_v63  ;;  %vm854_vm12 = vcmp.eq.s32.totalorder %v1780_v58, %v850_v63  ;;  %1014 = vperm.xlu0 %1516, %v984_v20   ;;  %v1525_v63 = vld [vmem:[%s2172_s4 + $0x10] sm:$0xff]  }
 0x126   : > { %1541 = vrcp.f32 %v872_v54  ;;  %v776_v42 = vsel %vm764_vm2, %v1534_v27, %v1851_v44  ;;  %v868_v5 = vsel %vm856_vm10, %v1536_v52, %v774_v31  ;;  %v864_v43 = vsel %vm852_vm11, %v1536_v52, %v770_v41  ;;  %v1156_v27 = vld [vmem:[%s2175_s7 + $0x18] sm:$0xff] }
 0x127   : > { %vm831_vm8 = vcmp.lt.s32.totalorder %v829_v35, %v830_v56  ;;  %v870_v29 = vsel %vm858_vm5, %v1536_v52, %v776_v42  ;;  %v866_v6 = vsel %vm854_vm12, %v1536_v52, %v772_v3  ;;  %v773_v48 = vsel %vm761_vm6, %v1538_v38, %v1868_v46 }
 0x128   : > { %v832_v59 = vsel %vm831_vm8, %v829_v35, %v830_v56  ;;  %v775_v51 = vsel %vm763_vm7, %v1538_v38, %v1865_v33  ;;  %v769_v28 = vsel %vm757_vm4, %v1538_v38, %v1889_v36  ;;  %v771_v2 = vsel %vm2180_vm14, %v1538_v38, %v1894_v32  ;;  %v1518_v36 = vld [vmem:[%s1798_s20] sm:$0xff]   ;;  %v986_v32 = vld [vmem:[%s2173_s5 + $0x38] sm:$0xff] }
 0x129   : > { %v833_v1 = vrot.slane %v832_v59, 1  ;;  %vm897_vm4 = vcmask 261120   ;;  %1024 = vperm.xlu1 %1517, %v986_v32   ;;  %1004 = vperm.xlu0 %1516, %v982_v22   ;;  %vm1047_vm6 = vcmask 392192   ;;  %vm1195_vm7 = vcmask 523264  }
 0x12b   : > { %v1540_v57 = vpop.eup %1539  ;;  %vm834_vm13 = vcmp.lt.s32.totalorder %v832_v59, %v833_v1 }
 0x12c   : > { %v871_v60 = vadd.f32 %v1540_v57, %v777_v45  ;;  %v835_v30 = vsel %vm834_vm13, %v832_v59, %v833_v1  ;;  %v1523_v59 = vld [vmem:[%s2172_s4] sm:$0xff]   ;;  %v1526_v1 = vld [vmem:[%s2172_s4 + $0x18] sm:$0xff]  }
 0x12d   : > { %vm855_vm15 = vcmp.eq.s32.totalorder %v1783_v61, %v835_v30  ;;  %vm857_vm1 = vcmp.eq.s32.totalorder %v1786_v62, %v835_v30  ;;  %vm851_vm2 = vcmp.eq.s32.totalorder %v1744_v8, %v835_v30  ;;  %vm853_vm0 = vcmp.eq.s32.totalorder %v1780_v58, %v835_v30  ;;  %v1519_v58 = vld [vmem:[%s1798_s20 + $0x8] sm:$0xff]   ;;  %1009 = vperm.xlu1 %1517, %v983_v19  }
 0x12e   : > { %1543 = vrcp.f32 %v871_v60  ;;  %v867_v14 = vsel %vm855_vm15, %v1540_v57, %v773_v48  ;;  %v869_v61 = vsel %vm857_vm1, %v1540_v57, %v775_v51  ;;  %v863_v46 = vsel %vm851_vm2, %v1540_v57, %v769_v28  ;;  %994 = vperm.xlu0 %1516, %v980_v24   ;;  %v1524_v60 = vld [vmem:[%s2172_s4 + $0x8] sm:$0xff]  }
 0x12f   : > { %v865_v15 = vsel %vm853_vm0, %v1540_v57, %v771_v2  ;;  %v1522_v57 = vld [vmem:[%s2037_s23] ss:$8 sps:$4 sm:$0xff]  }
 0x131   : > { %999 = vperm.xlu1 %1517, %v981_v21  }
 0x132   : > { %1172 = vperm.xlu0 %1516, %v1154_v25  }
 0x133   : > { %v1542_v4 = vpop.eup %1541 }
 0x134   : > { %v880_v7 = vmul.f32 %v1542_v4, %v868_v5  ;;  %v882_v10 = vmul.f32 %v1542_v4, %v870_v29  ;;  %v876_v47 = vmul.f32 %v1542_v4, %v864_v43  ;;  %v878_v44 = vmul.f32 %v1542_v4, %v866_v6 }
 0x135   : > { %989 = vperm.xlu1 %1517, %v979_v23  }
 0x136   : > { %v886_v11 = vpack.c.bf16 %v882_v10, %v880_v7  ;;  %v884_v12 = vpack.c.bf16 %v878_v44, %v876_v47  ;;  %1182 = vperm.xlu0 %1516, %v1156_v27  }
 0x138   : > { %916 = vmatprep.subr.bf16.mxu0 %v886_v11 }
 0x139   : > { %1167 = vperm.xlu1 %1517, %v1153_v9  }
 0x13b   : > { %v1544_v13 = vpop.eup %1543 }
 0x13c   : > { %v879_v16 = vmul.f32 %v1544_v13, %v867_v14  ;;  %v881_v62 = vmul.f32 %v1544_v13, %v869_v61  ;;  %v875_v33 = vmul.f32 %v1544_v13, %v863_v46  ;;  %v877_v17 = vmul.f32 %v1544_v13, %v865_v15 }
 0x13d   : > { %1177 = vperm.xlu1 %1517, %v1155_v26  }
 0x13e   : > { %v885_v18 = vpack.c.bf16 %v881_v62, %v879_v16  ;;  %v883_v8 = vpack.c.bf16 %v877_v17, %v875_v33 }
 0x140   : > { %917 = vmatpush1.bf16.msra.mxu0 %v885_v18 }
 0x141   : > { %918 = vmatprep.subr.bf16.mxu0 %v884_v12 }
 0x144   : > { %919 = vmatpush1.bf16.msra.mxu0 %v883_v8 }
 0x147   : > { %1424 = vmatmul.mubr.msk.bf16.vlgmr.msra.gmra.mxu0 %vm897_vm4, %v1518_v36 }
 0x148   : > { %946 = vmatprep.mubr.bf16.mxu0 %v1623_v0 }
 0x14f   : > { %1425 = vmatmul.mubr.msk.bf16.gmra.mxu0 %vm897_vm4, %v1519_v58 }
 0x150   : > { %1234 = vmatprep.mubr.bf16.mxu0 %v1623_v0 }
 0x19c   : > { %v1020_v7 = vpop.permute.xlu0 %1019 }
 0x1a0   : > { %v1015_v11 = vpop.permute.xlu0 %1014 }
 0x1a4   : > { %v1025_v47 = vpop.permute.xlu1 %1024  ;;  %v1005_v61 = vpop.permute.xlu0 %1004 }
 0x1a8   : > { %v1010_v48 = vpop.permute.xlu1 %1009 }
 0x1a9   : > { %v995_v23 = vpop.permute.xlu0 %994 }
 0x1ac   : > { %v1000_v33 = vpop.permute.xlu1 %999 }
 0x207   : > { %v938_v34 = vpop.f32.mrf.mxu0 }
 0x209   : > { %v940_v37 = vpop.f32.mrf.mxu0 }
 0x20b   : > { %v942_v39 = vpop.f32.mrf.mxu0 }
 0x20c   : > { %v957_v45 = vpack.c.bf16 %v942_v39, %v938_v34 }
 0x20d   : > { %v944_v49 = vpop.f32.mrf.mxu0 }
 0x20e   : > { %v958_v38 = vpack.c.bf16 %v944_v49, %v940_v37  ;;  %v990_v37 = vpop.permute.xlu1 %989 }
 0x20f   : > { %v948_v50 = vpop.f32.mrf.mxu0 }
 0x211   : > { %v950_v52 = vpop.f32.mrf.mxu0 }
 0x213   : > { %v952_v53 = vpop.f32.mrf.mxu0 }
 0x214   : > { %v959_v56 = vpack.c.bf16 %v952_v53, %v948_v50 }
 0x215   : > { %v954_v54 = vpop.f32.mrf.mxu0 }
 0x216   : > { %v960_v35 = vpack.c.bf16 %v954_v54, %v950_v52 }
 0x218   : > { %1070 = vmatprep.subr.bf16.mxu1 %v960_v35 }
 0x219   : > { %1071 = vmatpush1.bf16.msra.mxu1 %v959_v56 }
 0x21a   : > { %1072 = vmatprep.subr.bf16.mxu1 %v958_v38 }
 0x21d   : > { %1073 = vmatpush1.bf16.msra.mxu1 %v957_v45 }
 0x21e   : > { %1074 = vmatprep.subr.bf16.mxu1 %v1520_v40 }
 0x221   : > { %1075 = vmatpush1.bf16.msra.mxu1 %v1522_v57 }
 0x224   : > { %1432 = vmatmul.mubr.msk.bf16.vlgmr.msra.gmra.mxu1 %vm1047_vm6, %v1523_v59 }
 0x225   : > { %1102 = vmatprep.mubr.bf16.mxu1 %v1623_v0 }
 0x22c   : > { %1433 = vmatmul.mubr.msk.bf16.gmra.mxu1 %vm1047_vm6, %v1524_v60 }
 0x22d   : > { %1112 = vmatprep.mubr.bf16.mxu1 %v1623_v0 }
 0x234   : > { %1434 = vmatmul.mubr.msk.bf16.gmra.mxu1 %vm1047_vm6, %v1525_v63 }
 0x235   : > { %1122 = vmatprep.mubr.bf16.mxu1 %v1623_v0 }
 0x23c   : > { %1435 = vmatmul.mubr.msk.bf16.gmra.mxu1 %vm1047_vm6, %v1526_v1 }
 0x2e4   : > { %v1094_v31 = vpop.f32.mrf.mxu1 }
 0x2e5   : > { %v1095_v40 = vadd.f32 %v1094_v31, %v990_v37  ;;  %v1528_v31 = vld [vmem:[%s2174_s6 + $0x8] sm:$0xff]  }
 0x2e6   : > { %v1096_v42 = vpop.f32.mrf.mxu1 }
 0x2e7   : > { %v1097_v50 = vadd.f32 %v1096_v42, %v990_v37  ;;  %v1133_v1 = vmax.f32 %v1095_v40, 0.0 }
 0x2e8   : > { %v1098_v41 = vpop.f32.mrf.mxu1 }
 0x2e9   : > { %v1099_v53 = vadd.f32 %v1098_v41, %v995_v23  ;;  %v1134_v57 = vmax.f32 %v1097_v50, 0.0  ;;  %v1527_v41 = vld [vmem:[%s2174_s6] sm:$0xff]  }
 0x2ea   : > { %v1100_v3 = vpop.f32.mrf.mxu1 }
 0x2eb   : > { %v1101_v26 = vadd.f32 %v1100_v3, %v995_v23  ;;  %v1135_v59 = vmax.f32 %v1099_v53, 0.0  ;;  %v1168_v3 = vpop.permute.xlu1 %1167 }
 0x2ec   : > { %v1104_v4 = vpop.f32.mrf.mxu1 }
 0x2ed   : > { %v1105_v39 = vadd.f32 %v1104_v4, %v1000_v33  ;;  %v1136_v56 = vmax.f32 %v1101_v26, 0.0  ;;  %v1157_v42 = vpack.c.bf16 %v1135_v59, %v1133_v1 }
 0x2ee   : > { %v1106_v5 = vpop.f32.mrf.mxu1 }
 0x2ef   : > { %v1107_v20 = vadd.f32 %v1106_v5, %v1000_v33  ;;  %v1137_v45 = vmax.f32 %v1105_v39, 0.0  ;;  %v1158_v63 = vpack.c.bf16 %v1136_v56, %v1134_v57 }
 0x2f0   : > { %v1108_v29 = vpop.f32.mrf.mxu1 }
 0x2f1   : > { %v1109_v24 = vadd.f32 %v1108_v29, %v1005_v61  ;;  %v1138_v52 = vmax.f32 %v1107_v20, 0.0 }
 0x2f2   : > { %v1110_v43 = vpop.f32.mrf.mxu1 }
 0x2f3   : > { %v1111_v8 = vadd.f32 %v1110_v43, %v1005_v61  ;;  %v1139_v54 = vmax.f32 %v1109_v24, 0.0 }
 0x2f4   : > { %v1114_v6 = vpop.f32.mrf.mxu1 }
 0x2f5   : > { %v1115_v55 = vadd.f32 %v1114_v6, %v1010_v48  ;;  %v1140_v27 = vmax.f32 %v1111_v8, 0.0  ;;  %v1159_v60 = vpack.c.bf16 %v1139_v54, %v1137_v45 }
 0x2f6   : > { %v1116_v10 = vpop.f32.mrf.mxu1 }
 0x2f7   : > { %v1117_v16 = vadd.f32 %v1116_v10, %v1010_v48  ;;  %v1141_v49 = vmax.f32 %v1115_v55, 0.0  ;;  %v1160_v38 = vpack.c.bf16 %v1140_v27, %v1138_v52 }
 0x2f8   : > { %v1118_v44 = vpop.f32.mrf.mxu1 }
 0x2f9   : > { %v1119_v17 = vadd.f32 %v1118_v44, %v1015_v11  ;;  %v1142_v21 = vmax.f32 %v1117_v16, 0.0 }
 0x2fa   : > { %v1120_v30 = vpop.f32.mrf.mxu1 }
 0x2fb   : > { %v1121_v2 = vadd.f32 %v1120_v30, %v1015_v11  ;;  %v1143_v9 = vmax.f32 %v1119_v17, 0.0 }
 0x2fc   : > { %v1124_v12 = vpop.f32.mrf.mxu1 }
 0x2fd   : > { %v1125_v46 = vadd.f32 %v1124_v12, %v1020_v7  ;;  %v1144_v36 = vmax.f32 %v1121_v2, 0.0  ;;  %v1161_v35 = vpack.c.bf16 %v1143_v9, %v1141_v49  ;;  %v1178_v12 = vpop.permute.xlu1 %1177 }
 0x2fe   : > { %v1126_v51 = vpop.f32.mrf.mxu1 }
 0x2ff   : > { %v1127_v13 = vadd.f32 %v1126_v51, %v1020_v7  ;;  %v1145_v19 = vmax.f32 %v1125_v46, 0.0  ;;  %v1162_v34 = vpack.c.bf16 %v1144_v36, %v1142_v21  ;;  %v1173_v7 = vpop.permute.xlu0 %1172 }
 0x300   : > { %v1128_v28 = vpop.f32.mrf.mxu1 }
 0x301   : > { %v1129_v14 = vadd.f32 %v1128_v28, %v1025_v47  ;;  %v1146_v58 = vmax.f32 %v1127_v13, 0.0 }
 0x302   : > { %v1130_v15 = vpop.f32.mrf.mxu1 }
 0x303   : > { %v1131_v62 = vadd.f32 %v1130_v15, %v1025_v47  ;;  %v1147_v18 = vmax.f32 %v1129_v14, 0.0  ;;  %v1183_v61 = vpop.permute.xlu0 %1182 }
 0x305   : > { %v1148_v32 = vmax.f32 %v1131_v62, 0.0  ;;  %v1163_v25 = vpack.c.bf16 %v1147_v18, %v1145_v19 }
 0x307   : > { %v1164_v22 = vpack.c.bf16 %v1148_v32, %v1146_v58 }
 0x309   : > { %1210 = vmatprep.subr.bf16.mxu0 %v1164_v22 }
 0x30a   : > { %1211 = vmatpush1.bf16.msra.mxu0 %v1163_v25 }
 0x30b   : > { %1212 = vmatprep.subr.bf16.mxu0 %v1162_v34 }
 0x30e   : > { %1213 = vmatpush1.bf16.msra.mxu0 %v1161_v35 }
 0x30f   : > { %1214 = vmatprep.subr.bf16.mxu0 %v1160_v38 }
 0x312   : > { %1215 = vmatpush1.bf16.msra.mxu0 %v1159_v60 }
 0x313   : > { %1216 = vmatprep.subr.bf16.mxu0 %v1158_v63 }
 0x316   : > { %1217 = vmatpush1.bf16.msra.mxu0 %v1157_v42 }
 0x319   : > { %1438 = vmatmul.mubr.msk.bf16.vlgmr.msra.gmra.mxu0 %vm1195_vm7, %v1527_v41 }
 0x31a   : > { %1244 = vmatprep.mubr.bf16.mxu0 %v1623_v0 }
 0x321   : > { %1439 = vmatmul.mubr.msk.bf16.gmra.mxu0 %vm1195_vm7, %v1528_v31 }
 0x3d9   : > { %v1236_v4 = vpop.f32.mrf.mxu0 }
 0x3da   : > { %v1237_v5 = vadd.f32 %v1236_v4, %v1168_v3 }
 0x3db   : > { %v1238_v29 = vpop.f32.mrf.mxu0 }
 0x3dc   : > { %v1255_v43 = vmax.f32 %v1237_v5, 0.0  ;;  %v1239_v6 = vadd.f32 %v1238_v29, %v1168_v3 }
 0x3dd   : > { %v1240_v10 = vpop.f32.mrf.mxu0 }
 0x3de   : > { %1263 = vst [vmem:[%s2102_s14] sm:$0xff] %v1255_v43  ;;  %v1256_v0 = vmax.f32 %v1239_v6, 0.0  ;;  %v1241_v47 = vadd.f32 %v1240_v10, %v1173_v7 }
 0x3df   : > { %v1242_v44 = vpop.f32.mrf.mxu0 }
 0x3e0   : > { %1264 = vst [vmem:[%s2102_s14 + $0x8] sm:$0xff] %v1256_v0  ;;  %v1257_v30 = vmax.f32 %v1241_v47, 0.0  ;;  %v1243_v11 = vadd.f32 %v1242_v44, %v1173_v7 }
 0x3e1   : > { %v1246_v48 = vpop.f32.mrf.mxu0 }
 0x3e2   : > { %1265 = vst [vmem:[%s2102_s14 + $0x10] sm:$0xff] %v1257_v30  ;;  %v1258_v51 = vmax.f32 %v1243_v11, 0.0  ;;  %v1247_v28 = vadd.f32 %v1246_v48, %v1178_v12 }
 0x3e3   : > { %v1248_v2 = vpop.f32.mrf.mxu0 }
 0x3e4   : > { %1266 = vst [vmem:[%s2102_s14 + $0x18] sm:$0xff] %v1258_v51  ;;  %v1259_v13 = vmax.f32 %v1247_v28, 0.0  ;;  %v1249_v14 = vadd.f32 %v1248_v2, %v1178_v12 }
 0x3e5   : > { %v1250_v46 = vpop.f32.mrf.mxu0 }
 0x3e6   : > { %1267 = vst [vmem:[%s2102_s14 + $0x20] sm:$0xff] %v1259_v13  ;;  %v1260_v15 = vmax.f32 %v1249_v14, 0.0  ;;  %v1251_v16 = vadd.f32 %v1250_v46, %v1183_v61 }
 0x3e7   : > { %v1252_v62 = vpop.f32.mrf.mxu0 }
 0x3e8   : > { %1268 = vst [vmem:[%s2102_s14 + $0x28] sm:$0xff] %v1260_v15  ;;  %v1261_v33 = vmax.f32 %v1251_v16, 0.0  ;;  %v1253_v17 = vadd.f32 %v1252_v62, %v1183_v61 }
 0x3ea   : > { %1269 = vst [vmem:[%s2102_s14 + $0x30] sm:$0xff] %v1261_v33  ;;  %v1262_v18 = vmax.f32 %v1253_v17, 0.0 }
 0x3ec   : > { %1270 = vst [vmem:[%s2102_s14 + $0x38] sm:$0xff] %v1262_v18 }
 0x3ed   : > { %1558 = shalt.err (!%p1555_p5)
}
 0x3ee   : > { %s1559_s26 = scalar_lea.hbm %s2115_s12, 1024  ;;  %s1563_s16 = scalar_lea.hbm %s2176_s8, 2048 }
 0x3ef   : > { %p1560_p6 = scmp.ne.s32.totalorder %s2115_s12, %s1559_s26  ;;  %p1564_p10 = scmp.lt.s32.totalorder %s2115_s12, %s2176_s8 }
 0x3f0   : > { %p1565_p11 = scmp.lt.s32.totalorder %s1563_s16, %s1559_s26 }
 0x3f1   : > { %p1561_p7 = pnand %p1560_p6, %p1714_p4 }
 0x3f2   : > { %p1566_p12 = por %p1565_p11, %p1564_p10 }
 0x3f3   : > { %p1562_p9 = pneg %p1561_p7 }
 0x3f5   : > { %p1567_p13 = pnand %p1566_p12, %p1562_p9 }
 0x3f7   : > { %1570 = shalt.err (!%p1567_p13)
}
 0x3f8   : > { %s1627_s21 = smov 256   ;;  %s1628_s22 = smov 16  }
 0x3f9   : > { %1450 = dma.vmem_to_hbm [thread:$0]  (%p1714_p4), %s2117_s19, 1024, %s2115_s12, %s2123_s30, %s1627_s21, %s1627_s21, %s1628_s22  }
 0x3fa PF: > { %p1456_p0 = scmp.ge.s32.totalorder %s1621_s10, 2  ;;  %s1302_s24 = sand.u32 1, %s1601_s27  }
 0x3fb   : > { %s1303_s25 = scalar_lea.sflag [#allocation3], %s1302_s24 }
 0x3fc   : > { %p1453_p1 = pnand %p1456_p0, %p1721_p8 }
 0x3fe   : > { %p1454_p2 = pneg %p1453_p1 }
 0x400   : > { %1596 = dma.done.wait (%p1454_p2), %s1303_s25, 1024  }
 0x401   : > { %1598 = vsyncadd (%p1454_p2), %s1303_s25, 4294966272  ;;  %s21_s10 = sadd.s32 1, %s1621_s10   ;;  %s2181_s27 = smov %s1605_s28 }
 0x402   : > { %p18_p3 = scmp.ge.s32.totalorder %s21_s10, 4   ;;  %s2182_s28 = smov %s1609_s29 }
 0x403   : > { %s2183_s29 = smov %s1727_s18  ;;  %s2184_s30 = smov %s1617_s9 }
 0x404   : > { %s2185_s9 = smov %s2187_s13  ;;  %20 = sbr.rel (!%p18_p3) target bundleno = 4 (0x4), region = 96 }
 0x409   :  { %1308 = vsyncpa [#allocation3], 1 }
 0x40a   :  { %1310 = vsyncpa [#allocation3 + $0x1], 1 }

</bundles_post_ra>
